<compile_context>
chip_gen: v5e
topology: v5e:2x2
jax: 0.10.0
libtpu: 0.0.40
codegen_flags: <defaults>
</compile_context>

<pallas_src>
import functools

import jax
import jax.numpy as jnp
from jax.experimental import pallas as pl
from jax.experimental.pallas import tpu as pltpu

_LANE = 128
_SUBLANE = 16  # bf16 sublane packing


def _round_up(x, m):
    return ((x + m - 1) // m) * m


def _pad_to(a, shape):
    pads = [(0, t - s) for s, t in zip(a.shape, shape)]
    if all(p == (0, 0) for p in pads):
        return a
    return jnp.pad(a, pads)


def _sage_conv_kernel(adj_ref, x_src_ref, x_dst_ref, w_cat_ref, b_ref,
                      out_ref, agg_acc, *, apply_relu):
    k = pl.program_id(1)

    @pl.when(k == 0)
    def _():
        agg_acc[...] = jnp.zeros_like(agg_acc)

    # Mean-aggregation partial sum: [tm, tk] @ [tk, c_in_p] on the MXU, f32 acc.
    agg_acc[...] += jnp.dot(adj_ref[...], x_src_ref[...],
                            preferred_element_type=jnp.float32)

    @pl.when(k == pl.num_programs(1) - 1)
    def _():
        # Fused output GEMM: [agg | x_dst] @ [W_l ; W_r]  (single MXU pass, K=2*c_in_p)
        feat = jnp.concatenate(
            [agg_acc[...].astype(x_dst_ref.dtype), x_dst_ref[...]], axis=1)
        out = jnp.dot(feat, w_cat_ref[...], preferred_element_type=jnp.float32)
        out = out + b_ref[...]              # bias only in the finalize branch
        if apply_relu:
            out = jnp.maximum(out, 0.0)
        out_ref[...] = out.astype(out_ref.dtype)


def sage_conv_pallas(adj, x_src, x_dst, w_cat, b, *, apply_relu,
                     max_tm=512, max_tk=1024):
    """One SAGEConv layer.

    adj:   [n_dst, n_src] row-normalized (mean) adjacency, any float dtype.
    x_src: [n_src, c_in_p]  (feature dim already padded to a multiple of 128)
    x_dst: [n_dst, c_in_p]
    w_cat: [2*c_in_p, h_p]  bf16 stacked [W_l ; W_r]
    b:     [1, h_p]         f32 bias (lin_l only)
    returns [n_dst, h_p] f32.
    """
    n_dst, n_src = adj.shape
    c_in_p = x_src.shape[1]
    two_c_in_p, h_p = w_cat.shape

    tm = min(max_tm, _round_up(n_dst, _SUBLANE))
    tk = min(max_tk, _round_up(n_src, _LANE))
    n_dst_p = _round_up(n_dst, tm)
    n_src_p = _round_up(n_src, tk)

    adj_p = _pad_to(adj, (n_dst_p, n_src_p)).astype(jnp.bfloat16)
    x_src_p = _pad_to(x_src, (n_src_p, c_in_p)).astype(jnp.bfloat16)
    x_dst_p = _pad_to(x_dst, (n_dst_p, c_in_p)).astype(jnp.bfloat16)

    grid = (n_dst_p // tm, n_src_p // tk)
    kernel = functools.partial(_sage_conv_kernel, apply_relu=apply_relu)

    out = pl.pallas_call(
        kernel,
        out_shape=jax.ShapeDtypeStruct((n_dst_p, h_p), jnp.float32),
        grid_spec=pltpu.PrefetchScalarGridSpec(
            num_scalar_prefetch=0,
            grid=grid,
            in_specs=[
                pl.BlockSpec((tm, tk), lambda i, k: (i, k)),            # adj tile
                pl.BlockSpec((tk, c_in_p), lambda i, k: (k, 0)),        # x_src tile
                pl.BlockSpec((tm, c_in_p), lambda i, k: (i, 0)),        # x_dst tile
                pl.BlockSpec((two_c_in_p, h_p), lambda i, k: (0, 0)),   # stacked W
                pl.BlockSpec((1, h_p), lambda i, k: (0, 0)),            # bias
            ],
            out_specs=pl.BlockSpec((tm, h_p), lambda i, k: (i, 0)),
            scratch_shapes=[pltpu.VMEM((tm, c_in_p), jnp.float32)],
        ),
        compiler_params=pltpu.CompilerParams(
            dimension_semantics=("parallel", "arbitrary"),
            vmem_limit_bytes=32 * 1024 * 1024),
    )(adj_p, x_src_p, x_dst_p, w_cat, b)
    return out[:n_dst]


def build_mean_adj(edge_index, n_src, n_dst):
    """Densify edge_index into a row-normalized (mean-aggregation) matrix (f32)."""
    src = edge_index[0]
    dst = edge_index[1]
    a = jnp.zeros((n_dst, n_src), jnp.float32).at[dst, src].add(1.0)
    deg = a.sum(axis=1, keepdims=True)
    return a / jnp.maximum(deg, 1.0)


def init_sage_params(key, in_channels, hidden_channels, num_layers):
    """Per layer: (W_l [c_in,h], W_r [c_in,h], b [1,h]) in f32 (reference form)."""
    params = []
    c_in = in_channels
    for _ in range(num_layers):
        k1, k2, k3, key = jax.random.split(key, 4)
        w_l = 0.1 * jax.random.normal(k1, (c_in, hidden_channels), jnp.float32)
        w_r = 0.1 * jax.random.normal(k2, (c_in, hidden_channels), jnp.float32)
        b = 0.1 * jax.random.normal(k3, (1, hidden_channels), jnp.float32)
        params.append((w_l, w_r, b))
        c_in = hidden_channels
    return params


def prepare_sage_params(params):
    """Pad feature/hidden dims to 128 and stack [W_l ; W_r] once (bf16)."""
    prepped = []
    for w_l, w_r, b in params:
        c_in, h = w_l.shape
        c_in_p = _round_up(c_in, _LANE)
        h_p = _round_up(h, _LANE)
        w_l_p = _pad_to(w_l, (c_in_p, h_p))
        w_r_p = _pad_to(w_r, (c_in_p, h_p))
        w_cat = jnp.concatenate([w_l_p, w_r_p], axis=0).astype(jnp.bfloat16)
        b_p = _pad_to(b, (1, h_p)).astype(jnp.float32)
        prepped.append((w_cat, b_p, h))
    return prepped


def sage_forward(x, adjs, prepped_params, num_layers):
    """Mirrors SAGE.forward(x, adjs) with dropout in eval mode."""
    c_in_p0 = prepped_params[0][0].shape[0] // 2
    x = _pad_to(x, (x.shape[0], c_in_p0))      # lane-pad the input feature dim
    h = prepped_params[-1][2]
    for i, (edge_index, _e_id, size) in enumerate(adjs):
        n_src, n_dst = size
        adj = build_mean_adj(edge_index, n_src, n_dst)
        x_target = x[:n_dst]
        w_cat, b, h = prepped_params[i]
        x = sage_conv_pallas(adj, x, x_target, w_cat, b,
                             apply_relu=(i != num_layers - 1))
        # dropout(p=0.5): identity in eval mode
    return x[:, :h]


def sage_reference(x, adjs, params, num_layers):
    """Pure-JAX f32 reference for correctness checking."""
    for i, (edge_index, _e_id, size) in enumerate(adjs):
        n_src, n_dst = size
        adj = build_mean_adj(edge_index, n_src, n_dst)
        x_t = x[:n_dst]
        w_l, w_r, b = params[i]
        x = (adj @ x) @ w_l + b + x_t @ w_r
        if i != num_layers - 1:
            x = jnp.maximum(x, 0.0)
    return x


if __name__ == "__main__":
    key = jax.random.PRNGKey(0)

    in_channels = 4
    hidden_channels = 32
    num_layers = 2

    # Nested neighbor-sampling sizes: layer0 maps 16 source -> 12 target nodes,
    # layer1 maps 12 source -> 8 target nodes.
    n0, n1, n2 = 16, 12, 8
    e0, e1 = 40, 24

    k_x, k_s0, k_d0, k_s1, k_d1, k_p = jax.random.split(key, 6)
    x = jax.random.normal(k_x, (n0, in_channels), jnp.float32)

    edge_index0 = jnp.stack([
        jax.random.randint(k_s0, (e0,), 0, n0),   # sources
        jax.random.randint(k_d0, (e0,), 0, n1),   # targets
    ]).astype(jnp.int32)
    edge_index1 = jnp.stack([
        jax.random.randint(k_s1, (e1,), 0, n1),
        jax.random.randint(k_d1, (e1,), 0, n2),
    ]).astype(jnp.int32)

    adjs = [
        (edge_index0, None, (n0, n1)),
        (edge_index1, None, (n1, n2)),
    ]

    params = init_sage_params(k_p, in_channels, hidden_channels, num_layers)
    prepped = prepare_sage_params(params)

    out = sage_forward(x, adjs, prepped, num_layers)
    out = jax.block_until_ready(out)
    assert out.shape == (n2, hidden_channels), out.shape

    ref = sage_reference(x, adjs, params, num_layers)
    max_err = float(jnp.max(jnp.abs(out - ref)))
    assert max_err < 5e-2, f"max abs error {max_err} vs f32 reference"

    print("KERNEL_OK")
</pallas_src>

<mosaic_0001>
module attributes {stable_mosaic.version = 11 : i64} {
  func.func @_sage_conv_kernel(%arg0: i32, %arg1: i32, %arg2: memref<16x128xbf16, #tpu.memory_space<vmem>>, %arg3: memref<128x128xbf16, #tpu.memory_space<vmem>>, %arg4: memref<16x128xbf16, #tpu.memory_space<vmem>>, %arg5: memref<256x128xbf16, #tpu.memory_space<vmem>>, %arg6: memref<1x128xf32, #tpu.memory_space<vmem>>, %arg7: memref<16x128xf32, #tpu.memory_space<vmem>>, %arg8: memref<16x128xf32, #tpu.memory_space<vmem>>) attributes {dimension_semantics = [#tpu.dimension_semantics<parallel>, #tpu.dimension_semantics<arbitrary>], iteration_bounds = array<i64: 1, 1>, scalar_prefetch = 0 : i64, scratch_operands = 1 : i64, tpu.core_type = #tpu.core_type<tc>, window_params = [{transform_indices = @transform_0, window_bounds = array<i64: 16, 128>}, {transform_indices = @transform_1, window_bounds = array<i64: 128, 128>}, {transform_indices = @transform_2, window_bounds = array<i64: 16, 128>}, {pipeline_mode = #tpu.pipeline_mode<synchronous>, transform_indices = @transform_3, window_bounds = array<i64: 256, 128>}, {pipeline_mode = #tpu.pipeline_mode<synchronous>, transform_indices = @transform_4, window_bounds = array<i64: 1, 128>}, {transform_indices = @transform_5, window_bounds = array<i64: 16, 128>}]} {
    %c0_i32 = arith.constant 0 : i32
    %0 = arith.cmpi eq, %arg1, %c0_i32 : i32
    %1 = arith.extui %0 : i1 to i32
    %c0_i32_0 = arith.constant 0 : i32
    %2 = arith.cmpi ne, %1, %c0_i32_0 : i32
    scf.if %2 {
      %cst_10 = arith.constant 0.000000e+00 : f32
      %12 = vector.broadcast %cst_10 : f32 to vector<16x128xf32>
      %c0_11 = arith.constant 0 : index
      %c0_12 = arith.constant 0 : index
      %13 = vector.load %arg8[%c0_11, %c0_12] : memref<16x128xf32, #tpu.memory_space<vmem>>, vector<16x128xf32>
      tpu.vector_store %arg8[%c0_11, %c0_12], %12 {strides = array<i32>} : memref<16x128xf32, #tpu.memory_space<vmem>>, vector<16x128xf32>,
    } else {
    }
    %c0 = arith.constant 0 : index
    %c0_1 = arith.constant 0 : index
    %3 = vector.load %arg8[%c0, %c0_1] : memref<16x128xf32, #tpu.memory_space<vmem>>, vector<16x128xf32>
    %c0_2 = arith.constant 0 : index
    %c0_3 = arith.constant 0 : index
    %4 = vector.load %arg2[%c0_2, %c0_3] : memref<16x128xbf16, #tpu.memory_space<vmem>>, vector<16x128xbf16>
    %c0_4 = arith.constant 0 : index
    %c0_5 = arith.constant 0 : index
    %5 = vector.load %arg3[%c0_4, %c0_5] : memref<128x128xbf16, #tpu.memory_space<vmem>>, vector<128x128xbf16>
    %cst = arith.constant dense<0.000000e+00> : vector<16x128xf32>
    %6 = tpu.matmul %4, %5, %cst {dimension_numbers = #tpu.dot_dimension_numbers<[1], [0], [0], [1], [0, 0, 1, 1], [], []>} : vector<16x128xbf16>, vector<128x128xbf16>, vector<16x128xf32> -> vector<16x128xf32>
    %7 = arith.addf %3, %6 : vector<16x128xf32>
    %c0_6 = arith.constant 0 : index
    %c0_7 = arith.constant 0 : index
    %8 = vector.load %arg8[%c0_6, %c0_7] : memref<16x128xf32, #tpu.memory_space<vmem>>, vector<16x128xf32>
    tpu.vector_store %arg8[%c0_6, %c0_7], %7 {strides = array<i32>} : memref<16x128xf32, #tpu.memory_space<vmem>>, vector<16x128xf32>,
    %c0_i32_8 = arith.constant 0 : i32
    %9 = arith.cmpi eq, %arg1, %c0_i32_8 : i32
    %10 = arith.extui %9 : i1 to i32
    %c0_i32_9 = arith.constant 0 : i32
    %11 = arith.cmpi ne, %10, %c0_i32_9 : i32
    scf.if %11 {
      %c0_10 = arith.constant 0 : index
      %c0_11 = arith.constant 0 : index
      %12 = vector.load %arg8[%c0_10, %c0_11] : memref<16x128xf32, #tpu.memory_space<vmem>>, vector<16x128xf32>
      %13 = arith.truncf %12 : vector<16x128xf32> to vector<16x128xbf16>
      %c0_12 = arith.constant 0 : index
      %c0_13 = arith.constant 0 : index
      %14 = vector.load %arg4[%c0_12, %c0_13] : memref<16x128xbf16, #tpu.memory_space<vmem>>, vector<16x128xbf16>
      %15 = tpu.concatenate %13, %14 in 1 : vector<16x128xbf16>, vector<16x128xbf16> -> vector<16x256xbf16>
      %c0_14 = arith.constant 0 : index
      %c0_15 = arith.constant 0 : index
      %16 = vector.load %arg5[%c0_14, %c0_15] : memref<256x128xbf16, #tpu.memory_space<vmem>>, vector<256x128xbf16>
      %cst_16 = arith.constant dense<0.000000e+00> : vector<16x128xf32>
      %17 = tpu.matmul %15, %16, %cst_16 {dimension_numbers = #tpu.dot_dimension_numbers<[1], [0], [0], [1], [0, 0, 1, 1], [], []>} : vector<16x256xbf16>, vector<256x128xbf16>, vector<16x128xf32> -> vector<16x128xf32>
      %c0_17 = arith.constant 0 : index
      %c0_18 = arith.constant 0 : index
      %18 = vector.load %arg6[%c0_17, %c0_18] : memref<1x128xf32, #tpu.memory_space<vmem>>, vector<1x128xf32>
      %19 = vector.broadcast %18 : vector<1x128xf32> to vector<16x128xf32>
      %20 = arith.addf %17, %19 : vector<16x128xf32>
      %cst_19 = arith.constant 0.000000e+00 : f32
      %21 = vector.broadcast %cst_19 : f32 to vector<16x128xf32>
      %22 = arith.maximumf %20, %21 : vector<16x128xf32>
      %c0_20 = arith.constant 0 : index
      %c0_21 = arith.constant 0 : index
      %23 = vector.load %arg7[%c0_20, %c0_21] : memref<16x128xf32, #tpu.memory_space<vmem>>, vector<16x128xf32>
      tpu.vector_store %arg7[%c0_20, %c0_21], %22 {strides = array<i32>} : memref<16x128xf32, #tpu.memory_space<vmem>>, vector<16x128xf32>,
    } else {
    }
    return
  }
  func.func @transform_0(%arg0: i32, %arg1: i32) -> (i32, i32) {
    %c0_i32 = arith.constant 0 : i32
    return %arg0, %arg1 : i32, i32
  }
  func.func @transform_1(%arg0: i32, %arg1: i32) -> (i32, i32) {
    %c0_i32 = arith.constant 0 : i32
    %c0_i32_0 = arith.constant 0 : i32
    return %arg1, %c0_i32 : i32, i32
  }
  func.func @transform_2(%arg0: i32, %arg1: i32) -> (i32, i32) {
    %c0_i32 = arith.constant 0 : i32
    %c0_i32_0 = arith.constant 0 : i32
    return %arg0, %c0_i32 : i32, i32
  }
  func.func @transform_3(%arg0: i32, %arg1: i32) -> (i32, i32) {
    %c0_i32 = arith.constant 0 : i32
    %c0_i32_0 = arith.constant 0 : i32
    %c0_i32_1 = arith.constant 0 : i32
    return %c0_i32, %c0_i32_0 : i32, i32
  }
  func.func @transform_4(%arg0: i32, %arg1: i32) -> (i32, i32) {
    %c0_i32 = arith.constant 0 : i32
    %c0_i32_0 = arith.constant 0 : i32
    %c0_i32_1 = arith.constant 0 : i32
    return %c0_i32, %c0_i32_0 : i32, i32
  }
  func.func @transform_5(%arg0: i32, %arg1: i32) -> (i32, i32) {
    %c0_i32 = arith.constant 0 : i32
    %c0_i32_0 = arith.constant 0 : i32
    return %arg0, %c0_i32 : i32, i32
  }
}

</mosaic_0001>

<bundles_post_ra>
// kernel: tpu_custom_call.1
= control target key start
LH: loop header
LB: loop body
LE: loop exit
PB: predicated region body
PF: predicated region fallthrough
CT: control target
= control target key end

     0   :  { %10 = vsyncpa [#allocation4], 0  ;;  %s713_s0 = inlined_call_operand.hbm [shape: bf16[16,128], index: 0, kind: input, shape index: {}]   ;;  %s714_s1 = inlined_call_operand.hbm [shape: bf16[128,128], index: 1, kind: input, shape index: {}]   ;;  %s715_s2 = inlined_call_operand.hbm [shape: bf16[16,128], index: 2, kind: input, shape index: {}]   ;;  %s716_s3 = inlined_call_operand.hbm [shape: bf16[256,128], index: 3, kind: input, shape index: {}]   ;;  %s717_s4 = inlined_call_operand.vmem [shape: f32[1,128], index: 4, kind: input, shape index: {}]   ;;  %s718_s5 = inlined_call_operand.hbm [shape: f32[16,128], index: 5, kind: output, shape index: {}]  }
   0x1   :  { %11 = vsyncpa [#allocation7], 0 }
   0x2   :  { %12 = vsyncpa [#allocation10], 0 }
   0x3   :  { %13 = vsyncpa [#allocation5], 0  ;;  %s31_s20 = sshll.u32 %s714_s1, 4  ;;  %s656_s21 = smov [#allocation6]   ;;  %s32_s20 = int_to_ptr.hbm [resolvable:$true] %s31_s20 }
   0x4   :  { %s33_s22 = sshll.u32 %s656_s21, 4  ;;  %s18_s25 = sshll.u32 %s713_s0, 4  ;;  %s34_s22 = int_to_ptr.vmem [resolvable:$true] %s33_s22  ;;  %s19_s25 = int_to_ptr.hbm [resolvable:$true] %s18_s25 }
   0x5   :  { %s657_s26 = smov 64   ;;  %s658_s27 = smov 4  }
   0x6   :  { %39 = dma.hbm_to_vmem [thread:$0]  %s32_s20, 1024, %s34_s22, [#allocation7], %s657_s26, %s657_s26, %s658_s27  }
   0x7   :  { %s659_s28 = smov [#allocation3]   ;;  %s44_s7 = sshll.u32 %s715_s2, 4  ;;  %s45_s7 = int_to_ptr.hbm [resolvable:$true] %s44_s7 }
   0x8   :  { %s20_s29 = sshll.u32 %s659_s28, 4  ;;  %s57_s9 = sshll.u32 %s716_s3, 4  ;;  %s21_s29 = int_to_ptr.vmem [resolvable:$true] %s20_s29  ;;  %s58_s9 = int_to_ptr.hbm [resolvable:$true] %s57_s9 }
   0x9   :  { %26 = dma.hbm_to_vmem [thread:$0]  %s19_s25, 128, %s21_s29, [#allocation4], %s657_s26, %s657_s26, %s658_s27  }
   0xa   :  { %s660_s10 = smov [#allocation8]   ;;  %s661_s0 = smov [#allocation9]  }
   0xb   :  { %s46_s11 = sshll.u32 %s660_s10, 4  ;;  %s59_s12 = sshll.u32 %s661_s0, 4  ;;  %s47_s11 = int_to_ptr.vmem [resolvable:$true] %s46_s11  ;;  %s60_s12 = int_to_ptr.vmem [resolvable:$true] %s59_s12 }
   0xc   :  { %52 = dma.hbm_to_vmem [thread:$0]  %s45_s7, 128, %s47_s11, [#allocation7], %s657_s26, %s657_s26, %s658_s27  }
   0xd   :  { %65 = dma.hbm_to_vmem [thread:$0]  %s58_s9, 2048, %s60_s12, [#allocation10], %s657_s26, %s657_s26, %s658_s27  }
   0xe   :  { %648 = dma.done.wait [#allocation4], 128  }
   0xf   :  { %649 = vsyncadd [#allocation4], 4294967168 }
  0x10   :  { %650 = dma.done.wait [#allocation7], 1152  }
  0x11   :  { %651 = vsyncadd [#allocation7], 4294966144 }
  0x12   :  { %652 = dma.done.wait [#allocation10], 2048  }
  0x13   :  { %653 = vsyncadd [#allocation10], 4294965248  ;;  %v500_v0 = vld [vmem:[#allocation6 + $0x38] sm:$0xff]  ;;  %v499_v1 = vld [vmem:[#allocation6 + $0x30] sm:$0xff]  ;;  %s662_s13 = smov [#allocation11]   ;;  %s373_s17 = sshll.u32 %s718_s5, 4  ;;  %s374_s17 = int_to_ptr.hbm [resolvable:$true] %s373_s17 }
  0x14   :  { %164 = vmatpush.bf16.msra.mxu0 %v500_v0  ;;  %v517_v2 = vld [vmem:[#allocation9 + $0x78] sm:$0xff]  ;;  %v516_v4 = vld [vmem:[#allocation9 + $0x70] sm:$0xff]  ;;  %v498_v5 = vld [vmem:[#allocation6 + $0x28] sm:$0xff]  ;;  %s371_s14 = sshll.u32 %s662_s13, 4  ;;  %s664_s18 = smov 8   ;;  %s372_s14 = int_to_ptr.vmem [resolvable:$true] %s371_s14 }
  0x15   :  { %v509_v3 = vld [vmem:[#allocation9 + $0x38] sm:$0xff]  ;;  %349 = vmatpush.bf16.msra.mxu2 %v517_v2  ;;  %v508_v6 = vld [vmem:[#allocation9 + $0x30] sm:$0xff]  ;;  %v515_v7 = vld [vmem:[#allocation9 + $0x68] sm:$0xff] }
  0x16   :  { %335 = vmatpush.bf16.msra.mxu1 %v509_v3  ;;  %v497_v8 = vld [vmem:[#allocation6 + $0x20] sm:$0xff]  ;;  %v507_v9 = vld [vmem:[#allocation9 + $0x28] sm:$0xff]  ;;  %v514_v10 = vld [vmem:[#allocation9 + $0x60] sm:$0xff] }
  0x17   :  { %v496_v11 = vld [vmem:[#allocation6 + $0x18] sm:$0xff]  ;;  %v506_v12 = vld [vmem:[#allocation9 + $0x20] sm:$0xff]  ;;  %v513_v13 = vld [vmem:[#allocation9 + $0x58] sm:$0xff] }
  0x18   :  { %165 = vmatpush.bf16.msra.mxu0 %v499_v1  ;;  %v495_v14 = vld [vmem:[#allocation6 + $0x10] sm:$0xff]  ;;  %v512_v15 = vld [vmem:[#allocation9 + $0x50] sm:$0xff]  ;;  %v494_v16 = vld [vmem:[#allocation6 + $0x8] sm:$0xff] }
  0x19   :  { %350 = vmatpush.bf16.msra.mxu2 %v516_v4  ;;  %v511_v17 = vld [vmem:[#allocation9 + $0x48] sm:$0xff]  ;;  %v493_v18 = vld [vmem:[#allocation6] sm:$0xff]  ;;  %v492_v19 = vld [vmem:[#allocation3] sm:$0xff] }
  0x1a   :  { %336 = vmatpush.bf16.msra.mxu1 %v508_v6  ;;  %v505_v20 = vld [vmem:[#allocation9 + $0x18] sm:$0xff]  ;;  %v510_v21 = vld [vmem:[#allocation9 + $0x40] sm:$0xff]  ;;  %v504_v23 = vld [vmem:[#allocation9 + $0x10] sm:$0xff] }
  0x1b   :  { %v501_v22 = vld [vmem:[#allocation8] sm:$0xff]  ;;  %v503_v24 = vld [vmem:[#allocation9 + $0x8] sm:$0xff]  ;;  %v502_v25 = vld [vmem:[#allocation9] sm:$0xff] }
  0x1c   :  { %166 = vmatpush.bf16.msra.mxu0 %v498_v5  ;;  %v527_v33 = vld [vmem:[%s717_s4] ss:$0 sm:$0xff]  ;;  %s663_s4 = smov 128  }
  0x1d   :  { %351 = vmatpush.bf16.msra.mxu2 %v515_v7 }
  0x1e   :  { %337 = vmatpush.bf16.msra.mxu1 %v507_v9 }
  0x20   :  { %167 = vmatpush.bf16.msra.mxu0 %v497_v8 }
  0x21   :  { %352 = vmatpush.bf16.msra.mxu2 %v514_v10 }
  0x22   :  { %338 = vmatpush.bf16.msra.mxu1 %v506_v12 }
  0x24   :  { %168 = vmatpush.bf16.msra.mxu0 %v496_v11 }
  0x25   :  { %353 = vmatpush.bf16.msra.mxu2 %v513_v13 }
  0x26   :  { %339 = vmatpush.bf16.msra.mxu1 %v505_v20 }
  0x28   :  { %169 = vmatpush.bf16.msra.mxu0 %v495_v14 }
  0x29   :  { %354 = vmatpush.bf16.msra.mxu2 %v512_v15 }
  0x2a   :  { %340 = vmatpush.bf16.msra.mxu1 %v504_v23 }
  0x2c   :  { %170 = vmatpush.bf16.msra.mxu0 %v494_v16 }
  0x2d   :  { %355 = vmatpush.bf16.msra.mxu2 %v511_v17 }
  0x2e   :  { %341 = vmatpush.bf16.msra.mxu1 %v503_v24 }
  0x30   :  { %171 = vmatpush.bf16.msra.mxu0 %v493_v18 }
  0x31   :  { %356 = vmatpush.bf16.msra.mxu2 %v510_v21 }
  0x32   :  { %342 = vmatpush.bf16.msra.mxu1 %v502_v25 }
  0x33   :  { %172 = vmatmul.bf16.vlgmr.msra.gmra.mxu0 %v492_v19 }
  0x34   :  { %357 = vmatmul.bf16.vlgmr.msra.gmra.mxu2 %v501_v22 }
  0xb0   :  { %v173_v26 = vpop.f32.mrf.mxu0 }
  0xb1   :  { %v187_v27 = vpack.c.bf16 %v173_v26, %v173_v26 }
  0xb3   :  { %v193_v30 = vunpack.c.l.b16 %v187_v27 }
  0xb7   :  { %v358_v34 = vpop.f32.mrf.mxu2 }
  0xb8   :  { %v175_v28 = vpop.f32.mrf.mxu0 }
  0xb9   :  { %v188_v29 = vpack.c.bf16 %v175_v28, %v175_v28 }
  0xbb   :  { %v194_v31 = vunpack.c.l.b16 %v188_v29 }
  0xbd   :  { %v195_v32 = vpack.c.b16 %v194_v31, %v193_v30 }
  0xbf   :  { %343 = vmatmul.bf16.vlgmr.msra.gmra.mxu1 %v195_v32  ;;  %v360_v41 = vpop.f32.mrf.mxu2 }
 0x13c   :  { %v344_v35 = vpop.f32.mrf.mxu1 }
 0x13d   :  { %v345_v36 = vadd.f32 %v527_v33, %v344_v35 }
 0x13f   :  { %v359_v37 = vadd.f32 %v358_v34, %v345_v36 }
 0x141   :  { %v363_v38 = vmax.f32 %v359_v37, 0.0 }
 0x143   :  { %365 = vst [vmem:[#allocation11] sm:$0xff] %v363_v38 }
 0x144   :  { %v346_v39 = vpop.f32.mrf.mxu1 }
 0x145   :  { %v347_v40 = vadd.f32 %v527_v33, %v346_v39 }
 0x147   :  { %v361_v42 = vadd.f32 %v360_v41, %v347_v40 }
 0x149   :  { %v364_v43 = vmax.f32 %v361_v42, 0.0 }
 0x14b   :  { %366 = vst [vmem:[#allocation11 + $0x8] sm:$0xff] %v364_v43 }
 0x14c   :  { %379 = dma.vmem_to_hbm [thread:$0]  %s372_s14, 256, %s374_s17, [#allocation5], %s663_s4, %s663_s4, %s664_s18  }
 0x14d   :  { %654 = dma.done.wait [#allocation5], 256  }
 0x14e   :  { %655 = vsyncadd [#allocation5], 4294967040 }
 0x14f   :  { %384 = vsyncpa [#allocation4], 1 }
 0x150   :  { %385 = vsyncpa [#allocation7], 1 }
 0x151   :  { %386 = vsyncpa [#allocation10], 1 }
 0x152   :  { %387 = vsyncpa [#allocation5], 1 }

</bundles_post_ra>
